<compile_context>
chip_gen: v5e
topology: v5e:2x2
jax: 0.10.0
libtpu: 0.0.40
codegen_flags: <defaults>
</compile_context>

<pallas_src>
import jax
import jax.numpy as jnp
from jax.experimental import pallas as pl
from jax.experimental.pallas import tpu as pltpu


def _round_up(a, m):
    return -(-a // m) * m


# ---------------------------------------------------------------------------
# Fused kernel: cv1 (conv+BN+SiLU) -> cv2 (conv+BN+SiLU) -> (+ residual)
# ---------------------------------------------------------------------------
def _make_bottleneck_kernel(c1p, chp, c2, wp, lw, halo, with_residual):
    # Flat offsets of the 9 taps of a 3x3 'same' conv in padded-flat coordinates.
    taps = [(kh - 1) * wp + (kw - 1) for kh in range(3) for kw in range(3)]

    def kernel(x_ref, w1_ref, b1_ref, w2_ref, b2_ref, mask_ref, o_ref,
               xt_ref, y1_ref, y1t_ref):
        # ---- cv1: assemble (9*c1p, lw) tap matrix from shifted slices of x ----
        for t, d in enumerate(taps):
            xt_ref[pl.ds(t * c1p, c1p), :] = x_ref[0, :, pl.ds(halo + d, lw)]

        # Single MXU matmul, contraction = 9*c1p.  BN scale already folded into w1.
        y1 = jnp.dot(w1_ref[...], xt_ref[...], preferred_element_type=jnp.float32)
        y1 = y1 + b1_ref[...]
        y1 = y1 * jax.nn.sigmoid(y1)            # SiLU
        y1 = y1 * mask_ref[...]                 # zero borders == cv2's 'same' padding

        # Stage cv1 output in VMEM with a zero halo; it never touches HBM.
        y1_ref[...] = jnp.zeros_like(y1_ref)
        y1_ref[:, pl.ds(halo, lw)] = y1

        # ---- cv2: same constant-offset tap trick on the staged cv1 output ----
        for t, d in enumerate(taps):
            y1t_ref[pl.ds(t * chp, chp), :] = y1_ref[:, pl.ds(halo + d, lw)]

        y2 = jnp.dot(w2_ref[...], y1t_ref[...], preferred_element_type=jnp.float32)
        y2 = y2 + b2_ref[...]
        y2 = y2 * jax.nn.sigmoid(y2)            # SiLU

        if with_residual:
            y2 = y2 + x_ref[0, pl.ds(0, c2), pl.ds(halo, lw)]

        o_ref[0] = y2.astype(o_ref.dtype)

    return kernel


# ---------------------------------------------------------------------------
# Wrapper: NCHW in / NCHW out (matches the PyTorch module)
# ---------------------------------------------------------------------------
def bottleneck_forward(x_nchw, params, shortcut=True):
    B, C1, H, W = x_nchw.shape
    w1, w2 = params["w1"], params["w2"]
    CH, C2 = w1.shape[-1], w2.shape[-1]
    add = bool(shortcut) and (C1 == C2)

    Hp, Wp = H + 2, W + 2                    # spatially zero-padded ('same') grid
    L = Hp * Wp                              # padded grid, flattened
    LW = _round_up(L, 128)                   # lane-aligned working width
    HALO = _round_up(Wp + 1, 128)            # >= Wp+1 and lane-aligned
    Lx = LW + 2 * HALO                       # haloed flat length
    C1p = _round_up(C1, 8)                   # sublane-aligned channel counts
    CHp = _round_up(CH, 8)

    # --- input prep (XLA, cheap): spatial zero-pad, flatten, channel pad, flat halo
    x_pad = jnp.pad(x_nchw.astype(jnp.float32), ((0, 0), (0, 0), (1, 1), (1, 1)))
    x_flat = jnp.pad(x_pad.reshape(B, C1, L),
                     ((0, 0), (0, C1p - C1), (HALO, Lx - HALO - L)))

    # --- fold BN scale into weights; (Cout, 9*Cin) matmul orientation, padded ---
    w1s = w1.astype(jnp.float32) * params["s1"][None, None, None, :]
    w1s = jnp.pad(w1s, ((0, 0), (0, 0), (0, C1p - C1), (0, CHp - CH)))
    w1_t = w1s.transpose(3, 0, 1, 2).reshape(CHp, 9 * C1p)

    w2s = w2.astype(jnp.float32) * params["s2"][None, None, None, :]
    w2s = jnp.pad(w2s, ((0, 0), (0, 0), (0, CHp - CH), (0, 0)))
    w2_t = w2s.transpose(3, 0, 1, 2).reshape(C2, 9 * CHp)

    b1 = jnp.pad(params["b1"].astype(jnp.float32), (0, CHp - CH)).reshape(CHp, 1)
    b2 = params["b2"].astype(jnp.float32).reshape(C2, 1)

    # --- interior mask of the padded-flat grid (1.0 = real output pixel) ---
    q = jnp.arange(LW)
    hq, wq = q // Wp, q % Wp
    mask = (q < L) & (hq >= 1) & (hq <= H) & (wq >= 1) & (wq <= W)
    mask = mask.astype(jnp.float32).reshape(1, LW)

    kernel = _make_bottleneck_kernel(C1p, CHp, C2, Wp, LW, HALO, add)

    out_flat = pl.pallas_call(
        kernel,
        out_shape=jax.ShapeDtypeStruct((B, C2, LW), jnp.float32),
        grid=(B,),
        in_specs=[
            pl.BlockSpec((1, C1p, Lx), lambda b: (b, 0, 0)),
            pl.BlockSpec((CHp, 9 * C1p), lambda b: (0, 0)),
            pl.BlockSpec((CHp, 1), lambda b: (0, 0)),
            pl.BlockSpec((C2, 9 * CHp), lambda b: (0, 0)),
            pl.BlockSpec((C2, 1), lambda b: (0, 0)),
            pl.BlockSpec((1, LW), lambda b: (0, 0)),
        ],
        out_specs=pl.BlockSpec((1, C2, LW), lambda b: (b, 0, 0)),
        scratch_shapes=[
            pltpu.VMEM((9 * C1p, LW), jnp.float32),   # cv1 tap matrix
            pltpu.VMEM((CHp, Lx), jnp.float32),       # cv1 output, zero-haloed
            pltpu.VMEM((9 * CHp, LW), jnp.float32),   # cv2 tap matrix
        ],
        compiler_params=pltpu.CompilerParams(dimension_semantics=("parallel",)),
    )(x_flat, w1_t, b1, w2_t, b2, mask)

    # Extract the valid (interior) region -> already NCHW, no transposes anywhere.
    out = out_flat[:, :, :L].reshape(B, C2, Hp, Wp)[:, :, 1:H + 1, 1:W + 1]
    return out.astype(x_nchw.dtype)


# ---------------------------------------------------------------------------
# Pure-JAX reference (for correctness check)
# ---------------------------------------------------------------------------
def _ref_conv_block(x_nhwc, w, scale, bias):
    y = jax.lax.conv_general_dilated(
        x_nhwc, w, window_strides=(1, 1), padding="SAME",
        dimension_numbers=("NHWC", "HWIO", "NHWC"),
    )
    y = y * scale + bias
    return y * jax.nn.sigmoid(y)


def _ref_bottleneck(x_nchw, params, shortcut=True):
    c1 = x_nchw.shape[1]
    c2 = params["w2"].shape[-1]
    add = shortcut and (c1 == c2)
    x = jnp.transpose(x_nchw, (0, 2, 3, 1))
    y = _ref_conv_block(x, params["w1"], params["s1"], params["b1"])
    y = _ref_conv_block(y, params["w2"], params["s2"], params["b2"])
    if add:
        y = y + x
    return jnp.transpose(y, (0, 3, 1, 2))


# ---------------------------------------------------------------------------
# Main
# ---------------------------------------------------------------------------
if __name__ == "__main__":
    key = jax.random.PRNGKey(0)
    kx, k1, k2, k3, k4, k5, k6 = jax.random.split(key, 7)

    # Bottleneck(c1=4, c2=4, shortcut=True, e=0.5) -> hidden c_ = 2
    B, C1, H, W = 2, 4, 16, 16
    C2 = 4
    CH = int(C2 * 0.5)
    EPS = 1e-5  # nn.BatchNorm2d default

    # Deterministic synthetic parameters (HWIO conv weights, eval-mode BN stats)
    w1 = 0.2 * jax.random.normal(k1, (3, 3, C1, CH), jnp.float32)
    w2 = 0.2 * jax.random.normal(k2, (3, 3, CH, C2), jnp.float32)

    gamma1 = 1.0 + 0.1 * jax.random.normal(k3, (CH,), jnp.float32)
    beta1 = 0.1 * jax.random.normal(k4, (CH,), jnp.float32)
    mean1 = 0.05 * jnp.arange(CH, dtype=jnp.float32)
    var1 = 1.0 + 0.1 * jnp.arange(CH, dtype=jnp.float32)

    gamma2 = 1.0 + 0.1 * jax.random.normal(k5, (C2,), jnp.float32)
    beta2 = 0.1 * jax.random.normal(k6, (C2,), jnp.float32)
    mean2 = 0.03 * jnp.arange(C2, dtype=jnp.float32)
    var2 = 1.0 + 0.05 * jnp.arange(C2, dtype=jnp.float32)

    # Fold BN into scale / bias (eval semantics)
    s1 = gamma1 / jnp.sqrt(var1 + EPS)
    b1 = beta1 - mean1 * s1
    s2 = gamma2 / jnp.sqrt(var2 + EPS)
    b2 = beta2 - mean2 * s2

    params = {"w1": w1, "s1": s1, "b1": b1, "w2": w2, "s2": s2, "b2": b2}

    x = jax.random.normal(kx, (B, C1, H, W), jnp.float32)

    out = jax.block_until_ready(bottleneck_forward(x, params, shortcut=True))
    ref = jax.block_until_ready(_ref_bottleneck(x, params, shortcut=True))

    assert out.shape == (B, C2, H, W), out.shape
    assert jnp.allclose(out, ref, atol=1e-4, rtol=1e-4), (
        float(jnp.max(jnp.abs(out - ref)))
    )
    print("KERNEL_OK")
</pallas_src>

<mosaic_0001>
module attributes {stable_mosaic.version = 11 : i64} {
  func.func @kernel(%arg0: i32, %arg1: memref<1x8x640xf32, #tpu.memory_space<vmem>>, %arg2: memref<8x72xf32, #tpu.memory_space<vmem>>, %arg3: memref<8x1xf32, #tpu.memory_space<vmem>>, %arg4: memref<4x72xf32, #tpu.memory_space<vmem>>, %arg5: memref<4x1xf32, #tpu.memory_space<vmem>>, %arg6: memref<1x384xf32, #tpu.memory_space<vmem>>, %arg7: memref<1x4x384xf32, #tpu.memory_space<vmem>>, %arg8: memref<72x384xf32, #tpu.memory_space<vmem>>, %arg9: memref<8x640xf32, #tpu.memory_space<vmem>>, %arg10: memref<72x384xf32, #tpu.memory_space<vmem>>) attributes {dimension_semantics = [#tpu.dimension_semantics<parallel>], iteration_bounds = array<i64: 2>, scalar_prefetch = 0 : i64, scratch_operands = 3 : i64, tpu.core_type = #tpu.core_type<tc>, window_params = [{transform_indices = @transform_0, window_bounds = array<i64: 1, 8, 640>}, {pipeline_mode = #tpu.pipeline_mode<synchronous>, transform_indices = @transform_1, window_bounds = array<i64: 8, 72>}, {pipeline_mode = #tpu.pipeline_mode<synchronous>, transform_indices = @transform_2, window_bounds = array<i64: 8, 1>}, {pipeline_mode = #tpu.pipeline_mode<synchronous>, transform_indices = @transform_3, window_bounds = array<i64: 4, 72>}, {pipeline_mode = #tpu.pipeline_mode<synchronous>, transform_indices = @transform_4, window_bounds = array<i64: 4, 1>}, {pipeline_mode = #tpu.pipeline_mode<synchronous>, transform_indices = @transform_5, window_bounds = array<i64: 1, 384>}, {transform_indices = @transform_6, window_bounds = array<i64: 1, 4, 384>}]} {
    %c0 = arith.constant 0 : index
    %c0_0 = arith.constant 0 : index
    %c109 = arith.constant 109 : index
    %0 = vector.load %arg1[%c0, %c0_0, %c109] : memref<1x8x640xf32, #tpu.memory_space<vmem>>, vector<1x8x384xf32>
    %1 = vector.shape_cast %0 : vector<1x8x384xf32> to vector<8x384xf32>
    %c0_1 = arith.constant 0 : index
    %c0_2 = arith.constant 0 : index
    %2 = vector.load %arg8[%c0_1, %c0_2] : memref<72x384xf32, #tpu.memory_space<vmem>>, vector<8x384xf32>
    tpu.vector_store %arg8[%c0_1, %c0_2], %1 {strides = array<i32>} : memref<72x384xf32, #tpu.memory_space<vmem>>, vector<8x384xf32>,
    %c0_3 = arith.constant 0 : index
    %c0_4 = arith.constant 0 : index
    %c110 = arith.constant 110 : index
    %3 = vector.load %arg1[%c0_3, %c0_4, %c110] : memref<1x8x640xf32, #tpu.memory_space<vmem>>, vector<1x8x384xf32>
    %4 = vector.shape_cast %3 : vector<1x8x384xf32> to vector<8x384xf32>
    %c8 = arith.constant 8 : index
    %c0_5 = arith.constant 0 : index
    %5 = vector.load %arg8[%c8, %c0_5] : memref<72x384xf32, #tpu.memory_space<vmem>>, vector<8x384xf32>
    tpu.vector_store %arg8[%c8, %c0_5], %4 {strides = array<i32>} : memref<72x384xf32, #tpu.memory_space<vmem>>, vector<8x384xf32>,
    %c0_6 = arith.constant 0 : index
    %c0_7 = arith.constant 0 : index
    %c111 = arith.constant 111 : index
    %6 = vector.load %arg1[%c0_6, %c0_7, %c111] : memref<1x8x640xf32, #tpu.memory_space<vmem>>, vector<1x8x384xf32>
    %7 = vector.shape_cast %6 : vector<1x8x384xf32> to vector<8x384xf32>
    %c16 = arith.constant 16 : index
    %c0_8 = arith.constant 0 : index
    %8 = vector.load %arg8[%c16, %c0_8] : memref<72x384xf32, #tpu.memory_space<vmem>>, vector<8x384xf32>
    tpu.vector_store %arg8[%c16, %c0_8], %7 {strides = array<i32>} : memref<72x384xf32, #tpu.memory_space<vmem>>, vector<8x384xf32>,
    %c0_9 = arith.constant 0 : index
    %c0_10 = arith.constant 0 : index
    %c127 = arith.constant 127 : index
    %9 = vector.load %arg1[%c0_9, %c0_10, %c127] : memref<1x8x640xf32, #tpu.memory_space<vmem>>, vector<1x8x384xf32>
    %10 = vector.shape_cast %9 : vector<1x8x384xf32> to vector<8x384xf32>
    %c24 = arith.constant 24 : index
    %c0_11 = arith.constant 0 : index
    %11 = vector.load %arg8[%c24, %c0_11] : memref<72x384xf32, #tpu.memory_space<vmem>>, vector<8x384xf32>
    tpu.vector_store %arg8[%c24, %c0_11], %10 {strides = array<i32>} : memref<72x384xf32, #tpu.memory_space<vmem>>, vector<8x384xf32>,
    %c0_12 = arith.constant 0 : index
    %c0_13 = arith.constant 0 : index
    %c128 = arith.constant 128 : index
    %12 = vector.load %arg1[%c0_12, %c0_13, %c128] : memref<1x8x640xf32, #tpu.memory_space<vmem>>, vector<1x8x384xf32>
    %13 = vector.shape_cast %12 : vector<1x8x384xf32> to vector<8x384xf32>
    %c32 = arith.constant 32 : index
    %c0_14 = arith.constant 0 : index
    %14 = vector.load %arg8[%c32, %c0_14] : memref<72x384xf32, #tpu.memory_space<vmem>>, vector<8x384xf32>
    tpu.vector_store %arg8[%c32, %c0_14], %13 {strides = array<i32>} : memref<72x384xf32, #tpu.memory_space<vmem>>, vector<8x384xf32>,
    %c0_15 = arith.constant 0 : index
    %c0_16 = arith.constant 0 : index
    %c129 = arith.constant 129 : index
    %15 = vector.load %arg1[%c0_15, %c0_16, %c129] : memref<1x8x640xf32, #tpu.memory_space<vmem>>, vector<1x8x384xf32>
    %16 = vector.shape_cast %15 : vector<1x8x384xf32> to vector<8x384xf32>
    %c40 = arith.constant 40 : index
    %c0_17 = arith.constant 0 : index
    %17 = vector.load %arg8[%c40, %c0_17] : memref<72x384xf32, #tpu.memory_space<vmem>>, vector<8x384xf32>
    tpu.vector_store %arg8[%c40, %c0_17], %16 {strides = array<i32>} : memref<72x384xf32, #tpu.memory_space<vmem>>, vector<8x384xf32>,
    %c0_18 = arith.constant 0 : index
    %c0_19 = arith.constant 0 : index
    %c145 = arith.constant 145 : index
    %18 = vector.load %arg1[%c0_18, %c0_19, %c145] : memref<1x8x640xf32, #tpu.memory_space<vmem>>, vector<1x8x384xf32>
    %19 = vector.shape_cast %18 : vector<1x8x384xf32> to vector<8x384xf32>
    %c48 = arith.constant 48 : index
    %c0_20 = arith.constant 0 : index
    %20 = vector.load %arg8[%c48, %c0_20] : memref<72x384xf32, #tpu.memory_space<vmem>>, vector<8x384xf32>
    tpu.vector_store %arg8[%c48, %c0_20], %19 {strides = array<i32>} : memref<72x384xf32, #tpu.memory_space<vmem>>, vector<8x384xf32>,
    %c0_21 = arith.constant 0 : index
    %c0_22 = arith.constant 0 : index
    %c146 = arith.constant 146 : index
    %21 = vector.load %arg1[%c0_21, %c0_22, %c146] : memref<1x8x640xf32, #tpu.memory_space<vmem>>, vector<1x8x384xf32>
    %22 = vector.shape_cast %21 : vector<1x8x384xf32> to vector<8x384xf32>
    %c56 = arith.constant 56 : index
    %c0_23 = arith.constant 0 : index
    %23 = vector.load %arg8[%c56, %c0_23] : memref<72x384xf32, #tpu.memory_space<vmem>>, vector<8x384xf32>
    tpu.vector_store %arg8[%c56, %c0_23], %22 {strides = array<i32>} : memref<72x384xf32, #tpu.memory_space<vmem>>, vector<8x384xf32>,
    %c0_24 = arith.constant 0 : index
    %c0_25 = arith.constant 0 : index
    %c147 = arith.constant 147 : index
    %24 = vector.load %arg1[%c0_24, %c0_25, %c147] : memref<1x8x640xf32, #tpu.memory_space<vmem>>, vector<1x8x384xf32>
    %25 = vector.shape_cast %24 : vector<1x8x384xf32> to vector<8x384xf32>
    %c64 = arith.constant 64 : index
    %c0_26 = arith.constant 0 : index
    %26 = vector.load %arg8[%c64, %c0_26] : memref<72x384xf32, #tpu.memory_space<vmem>>, vector<8x384xf32>
    tpu.vector_store %arg8[%c64, %c0_26], %25 {strides = array<i32>} : memref<72x384xf32, #tpu.memory_space<vmem>>, vector<8x384xf32>,
    %c0_27 = arith.constant 0 : index
    %c0_28 = arith.constant 0 : index
    %27 = vector.load %arg2[%c0_27, %c0_28] : memref<8x72xf32, #tpu.memory_space<vmem>>, vector<8x72xf32>
    %c0_29 = arith.constant 0 : index
    %c0_30 = arith.constant 0 : index
    %28 = vector.load %arg8[%c0_29, %c0_30] : memref<72x384xf32, #tpu.memory_space<vmem>>, vector<72x384xf32>
    %cst = arith.constant dense<0.000000e+00> : vector<8x384xf32>
    %29 = tpu.matmul %27, %28, %cst {dimension_numbers = #tpu.dot_dimension_numbers<[1], [0], [0], [1], [0, 0, 1, 1], [], []>} : vector<8x72xf32>, vector<72x384xf32>, vector<8x384xf32> -> vector<8x384xf32>
    %c0_31 = arith.constant 0 : index
    %c0_32 = arith.constant 0 : index
    %30 = vector.load %arg3[%c0_31, %c0_32] : memref<8x1xf32, #tpu.memory_space<vmem>>, vector<8x1xf32>
    %31 = vector.broadcast %30 : vector<8x1xf32> to vector<8x384xf32>
    %32 = arith.addf %29, %31 : vector<8x384xf32>
    %33 = arith.negf %32 : vector<8x384xf32>
    %34 = math.exp %33 : vector<8x384xf32>
    %cst_33 = arith.constant 1.000000e+00 : f32
    %35 = vector.broadcast %cst_33 : f32 to vector<8x384xf32>
    %36 = arith.addf %35, %34 : vector<8x384xf32>
    %37 = arith.divf %35, %36 : vector<8x384xf32>
    %38 = arith.mulf %32, %37 : vector<8x384xf32>
    %c0_34 = arith.constant 0 : index
    %c0_35 = arith.constant 0 : index
    %39 = vector.load %arg6[%c0_34, %c0_35] : memref<1x384xf32, #tpu.memory_space<vmem>>, vector<1x384xf32>
    %40 = vector.broadcast %39 : vector<1x384xf32> to vector<8x384xf32>
    %41 = arith.mulf %38, %40 : vector<8x384xf32>
    %cst_36 = arith.constant 0.000000e+00 : f32
    %42 = vector.broadcast %cst_36 : f32 to vector<8x640xf32>
    %c0_37 = arith.constant 0 : index
    %c0_38 = arith.constant 0 : index
    %43 = vector.load %arg9[%c0_37, %c0_38] : memref<8x640xf32, #tpu.memory_space<vmem>>, vector<8x640xf32>
    tpu.vector_store %arg9[%c0_37, %c0_38], %42 {strides = array<i32>} : memref<8x640xf32, #tpu.memory_space<vmem>>, vector<8x640xf32>,
    %c0_39 = arith.constant 0 : index
    %c128_40 = arith.constant 128 : index
    %44 = vector.load %arg9[%c0_39, %c128_40] : memref<8x640xf32, #tpu.memory_space<vmem>>, vector<8x384xf32>
    tpu.vector_store %arg9[%c0_39, %c128_40], %41 {strides = array<i32>} : memref<8x640xf32, #tpu.memory_space<vmem>>, vector<8x384xf32>,
    %c0_41 = arith.constant 0 : index
    %c109_42 = arith.constant 109 : index
    %45 = vector.load %arg9[%c0_41, %c109_42] : memref<8x640xf32, #tpu.memory_space<vmem>>, vector<8x384xf32>
    %c0_43 = arith.constant 0 : index
    %c0_44 = arith.constant 0 : index
    %46 = vector.load %arg10[%c0_43, %c0_44] : memref<72x384xf32, #tpu.memory_space<vmem>>, vector<8x384xf32>
    tpu.vector_store %arg10[%c0_43, %c0_44], %45 {strides = array<i32>} : memref<72x384xf32, #tpu.memory_space<vmem>>, vector<8x384xf32>,
    %c0_45 = arith.constant 0 : index
    %c110_46 = arith.constant 110 : index
    %47 = vector.load %arg9[%c0_45, %c110_46] : memref<8x640xf32, #tpu.memory_space<vmem>>, vector<8x384xf32>
    %c8_47 = arith.constant 8 : index
    %c0_48 = arith.constant 0 : index
    %48 = vector.load %arg10[%c8_47, %c0_48] : memref<72x384xf32, #tpu.memory_space<vmem>>, vector<8x384xf32>
    tpu.vector_store %arg10[%c8_47, %c0_48], %47 {strides = array<i32>} : memref<72x384xf32, #tpu.memory_space<vmem>>, vector<8x384xf32>,
    %c0_49 = arith.constant 0 : index
    %c111_50 = arith.constant 111 : index
    %49 = vector.load %arg9[%c0_49, %c111_50] : memref<8x640xf32, #tpu.memory_space<vmem>>, vector<8x384xf32>
    %c16_51 = arith.constant 16 : index
    %c0_52 = arith.constant 0 : index
    %50 = vector.load %arg10[%c16_51, %c0_52] : memref<72x384xf32, #tpu.memory_space<vmem>>, vector<8x384xf32>
    tpu.vector_store %arg10[%c16_51, %c0_52], %49 {strides = array<i32>} : memref<72x384xf32, #tpu.memory_space<vmem>>, vector<8x384xf32>,
    %c0_53 = arith.constant 0 : index
    %c127_54 = arith.constant 127 : index
    %51 = vector.load %arg9[%c0_53, %c127_54] : memref<8x640xf32, #tpu.memory_space<vmem>>, vector<8x384xf32>
    %c24_55 = arith.constant 24 : index
    %c0_56 = arith.constant 0 : index
    %52 = vector.load %arg10[%c24_55, %c0_56] : memref<72x384xf32, #tpu.memory_space<vmem>>, vector<8x384xf32>
    tpu.vector_store %arg10[%c24_55, %c0_56], %51 {strides = array<i32>} : memref<72x384xf32, #tpu.memory_space<vmem>>, vector<8x384xf32>,
    %c0_57 = arith.constant 0 : index
    %c128_58 = arith.constant 128 : index
    %53 = vector.load %arg9[%c0_57, %c128_58] : memref<8x640xf32, #tpu.memory_space<vmem>>, vector<8x384xf32>
    %c32_59 = arith.constant 32 : index
    %c0_60 = arith.constant 0 : index
    %54 = vector.load %arg10[%c32_59, %c0_60] : memref<72x384xf32, #tpu.memory_space<vmem>>, vector<8x384xf32>
    tpu.vector_store %arg10[%c32_59, %c0_60], %53 {strides = array<i32>} : memref<72x384xf32, #tpu.memory_space<vmem>>, vector<8x384xf32>,
    %c0_61 = arith.constant 0 : index
    %c129_62 = arith.constant 129 : index
    %55 = vector.load %arg9[%c0_61, %c129_62] : memref<8x640xf32, #tpu.memory_space<vmem>>, vector<8x384xf32>
    %c40_63 = arith.constant 40 : index
    %c0_64 = arith.constant 0 : index
    %56 = vector.load %arg10[%c40_63, %c0_64] : memref<72x384xf32, #tpu.memory_space<vmem>>, vector<8x384xf32>
    tpu.vector_store %arg10[%c40_63, %c0_64], %55 {strides = array<i32>} : memref<72x384xf32, #tpu.memory_space<vmem>>, vector<8x384xf32>,
    %c0_65 = arith.constant 0 : index
    %c145_66 = arith.constant 145 : index
    %57 = vector.load %arg9[%c0_65, %c145_66] : memref<8x640xf32, #tpu.memory_space<vmem>>, vector<8x384xf32>
    %c48_67 = arith.constant 48 : index
    %c0_68 = arith.constant 0 : index
    %58 = vector.load %arg10[%c48_67, %c0_68] : memref<72x384xf32, #tpu.memory_space<vmem>>, vector<8x384xf32>
    tpu.vector_store %arg10[%c48_67, %c0_68], %57 {strides = array<i32>} : memref<72x384xf32, #tpu.memory_space<vmem>>, vector<8x384xf32>,
    %c0_69 = arith.constant 0 : index
    %c146_70 = arith.constant 146 : index
    %59 = vector.load %arg9[%c0_69, %c146_70] : memref<8x640xf32, #tpu.memory_space<vmem>>, vector<8x384xf32>
    %c56_71 = arith.constant 56 : index
    %c0_72 = arith.constant 0 : index
    %60 = vector.load %arg10[%c56_71, %c0_72] : memref<72x384xf32, #tpu.memory_space<vmem>>, vector<8x384xf32>
    tpu.vector_store %arg10[%c56_71, %c0_72], %59 {strides = array<i32>} : memref<72x384xf32, #tpu.memory_space<vmem>>, vector<8x384xf32>,
    %c0_73 = arith.constant 0 : index
    %c147_74 = arith.constant 147 : index
    %61 = vector.load %arg9[%c0_73, %c147_74] : memref<8x640xf32, #tpu.memory_space<vmem>>, vector<8x384xf32>
    %c64_75 = arith.constant 64 : index
    %c0_76 = arith.constant 0 : index
    %62 = vector.load %arg10[%c64_75, %c0_76] : memref<72x384xf32, #tpu.memory_space<vmem>>, vector<8x384xf32>
    tpu.vector_store %arg10[%c64_75, %c0_76], %61 {strides = array<i32>} : memref<72x384xf32, #tpu.memory_space<vmem>>, vector<8x384xf32>,
    %c0_77 = arith.constant 0 : index
    %c0_78 = arith.constant 0 : index
    %63 = vector.load %arg4[%c0_77, %c0_78] : memref<4x72xf32, #tpu.memory_space<vmem>>, vector<4x72xf32>
    %c0_79 = arith.constant 0 : index
    %c0_80 = arith.constant 0 : index
    %64 = vector.load %arg10[%c0_79, %c0_80] : memref<72x384xf32, #tpu.memory_space<vmem>>, vector<72x384xf32>
    %cst_81 = arith.constant dense<0.000000e+00> : vector<4x384xf32>
    %65 = tpu.matmul %63, %64, %cst_81 {dimension_numbers = #tpu.dot_dimension_numbers<[1], [0], [0], [1], [0, 0, 1, 1], [], []>} : vector<4x72xf32>, vector<72x384xf32>, vector<4x384xf32> -> vector<4x384xf32>
    %c0_82 = arith.constant 0 : index
    %c0_83 = arith.constant 0 : index
    %66 = vector.load %arg5[%c0_82, %c0_83] : memref<4x1xf32, #tpu.memory_space<vmem>>, vector<4x1xf32>
    %67 = vector.broadcast %66 : vector<4x1xf32> to vector<4x384xf32>
    %68 = arith.addf %65, %67 : vector<4x384xf32>
    %69 = arith.negf %68 : vector<4x384xf32>
    %70 = math.exp %69 : vector<4x384xf32>
    %cst_84 = arith.constant 1.000000e+00 : f32
    %71 = vector.broadcast %cst_84 : f32 to vector<4x384xf32>
    %72 = arith.addf %71, %70 : vector<4x384xf32>
    %73 = arith.divf %71, %72 : vector<4x384xf32>
    %74 = arith.mulf %68, %73 : vector<4x384xf32>
    %c0_85 = arith.constant 0 : index
    %c0_86 = arith.constant 0 : index
    %c128_87 = arith.constant 128 : index
    %75 = vector.load %arg1[%c0_85, %c0_86, %c128_87] : memref<1x8x640xf32, #tpu.memory_space<vmem>>, vector<1x4x384xf32>
    %76 = vector.shape_cast %75 : vector<1x4x384xf32> to vector<4x384xf32>
    %77 = arith.addf %74, %76 : vector<4x384xf32>
    %c0_88 = arith.constant 0 : index
    %c0_89 = arith.constant 0 : index
    %c0_90 = arith.constant 0 : index
    %78 = vector.load %arg7[%c0_88, %c0_89, %c0_90] : memref<1x4x384xf32, #tpu.memory_space<vmem>>, vector<1x4x384xf32>
    %79 = vector.shape_cast %78 : vector<1x4x384xf32> to vector<4x384xf32>
    %80 = vector.shape_cast %77 : vector<4x384xf32> to vector<1x4x384xf32>
    tpu.vector_store %arg7[%c0_88, %c0_89, %c0_90], %80 {strides = array<i32>} : memref<1x4x384xf32, #tpu.memory_space<vmem>>, vector<1x4x384xf32>,
    return
  }
  func.func @transform_0(%arg0: i32) -> (i32, i32, i32) {
    %c0_i32 = arith.constant 0 : i32
    %c0_i32_0 = arith.constant 0 : i32
    %c0_i32_1 = arith.constant 0 : i32
    return %arg0, %c0_i32, %c0_i32_0 : i32, i32, i32
  }
  func.func @transform_1(%arg0: i32) -> (i32, i32) {
    %c0_i32 = arith.constant 0 : i32
    %c0_i32_0 = arith.constant 0 : i32
    %c0_i32_1 = arith.constant 0 : i32
    return %c0_i32, %c0_i32_0 : i32, i32
  }
  func.func @transform_2(%arg0: i32) -> (i32, i32) {
    %c0_i32 = arith.constant 0 : i32
    %c0_i32_0 = arith.constant 0 : i32
    %c0_i32_1 = arith.constant 0 : i32
    return %c0_i32, %c0_i32_0 : i32, i32
  }
  func.func @transform_3(%arg0: i32) -> (i32, i32) {
    %c0_i32 = arith.constant 0 : i32
    %c0_i32_0 = arith.constant 0 : i32
    %c0_i32_1 = arith.constant 0 : i32
    return %c0_i32, %c0_i32_0 : i32, i32
  }
  func.func @transform_4(%arg0: i32) -> (i32, i32) {
    %c0_i32 = arith.constant 0 : i32
    %c0_i32_0 = arith.constant 0 : i32
    %c0_i32_1 = arith.constant 0 : i32
    return %c0_i32, %c0_i32_0 : i32, i32
  }
  func.func @transform_5(%arg0: i32) -> (i32, i32) {
    %c0_i32 = arith.constant 0 : i32
    %c0_i32_0 = arith.constant 0 : i32
    %c0_i32_1 = arith.constant 0 : i32
    return %c0_i32, %c0_i32_0 : i32, i32
  }
  func.func @transform_6(%arg0: i32) -> (i32, i32, i32) {
    %c0_i32 = arith.constant 0 : i32
    %c0_i32_0 = arith.constant 0 : i32
    %c0_i32_1 = arith.constant 0 : i32
    return %arg0, %c0_i32, %c0_i32_0 : i32, i32, i32
  }
}

</mosaic_0001>

<bundles_post_ra>
// kernel: tpu_custom_call.1
= control target key start
LH: loop header
LB: loop body
LE: loop exit
PB: predicated region body
PF: predicated region fallthrough
CT: control target
= control target key end

     0   :  { %11 = vsyncpa [#allocation6], 0  ;;  %s1816_s0 = inlined_call_operand.hbm [shape: f32[2,8,640], index: 0, kind: input, shape index: {}]   ;;  %s1817_s1 = inlined_call_operand.vmem [shape: f32[8,72], index: 1, kind: input, shape index: {}]   ;;  %s1818_s2 = inlined_call_operand.vmem [shape: f32[8,1], index: 2, kind: input, shape index: {}]   ;;  %s1819_s3 = inlined_call_operand.vmem [shape: f32[4,72], index: 3, kind: input, shape index: {}]   ;;  %s1820_s4 = inlined_call_operand.vmem [shape: f32[4,1], index: 4, kind: input, shape index: {}]   ;;  %s1821_s5 = inlined_call_operand.vmem [shape: f32[1,384], index: 5, kind: input, shape index: {}]   ;;  %s1822_s6 = inlined_call_operand.hbm [shape: f32[2,4,384], index: 6, kind: output, shape index: {}]  }
   0x1   :  { %13 = vsyncpa [#allocation6 + $0x1], 0 }
   0x2   :  { %14 = vsyncpa [#allocation7], 0 }
   0x3   :  { %16 = vsyncpa [#allocation7 + $0x1], 0  ;;  %s1530_s21 = smov 0   ;;  %s1532_s22 = smov 0  }
   0x4   :  { %s1534_s23 = smov 0   ;;  %s1536_s24 = smov 0  }
   0x5 LB: > { %s1551_s25 = sadd.s32 4294967295, %s1483_s24   ;;  %s1125_s26 = sadd.s32 4294967294, %s1483_s24   ;;  %s1483_s24 = sphi %s1536_s24, %s1848_s24   ;;  %s1479_s23 = sphi %s1534_s23, %s1847_s23   ;;  %s1475_s22 = sphi %s1532_s22, %s1846_s22   ;;  %s1471_s21 = sphi %s1530_s21, %s1845_s21  }
   0x6   : > { %s1555_s27 = sadd.s32 1, %s1483_s24   ;;  %s29_s28 = sadd.s32 1, %s1479_s23 }
   0x7   : > { %s26_s29 = ssub.s32 %s1483_s24, %s1555_s27  ;;  %p36_p0 = scmp.ne.s32.totalorder %s1479_s23, %s1475_s22 }
   0x8   : > { %p27_p1 = scmp.eq.s32.totalorder %s26_s29, 0  ;;  %p37_p2 = scmp.eq.s32.totalorder %s1483_s24, 0 }
   0x9   : > { %p42_p3 = scmp.ne.s32.totalorder %s1475_s22, %s1471_s21  ;;  %p43_p4 = scmp.eq.s32.totalorder %s1551_s25, 0 }
   0xa   : > { %s1567_s30 = scalar_select %p27_p1, %s1479_s23, %s29_s28  }
   0xb   : > { %p38_p5 = por %p37_p2, %p36_p0  ;;  %p1569_p6 = por %p43_p4, %p42_p3 }
   0xc   : > { %1826 = sst [smem:[#allocation11_spill]] %s1567_s30  ;;  %p171_p7 = scmp.eq.s32.totalorder %s1551_s25, 1 }
   0xd   : > { %p177_p8 = scmp.eq.s32.totalorder %s1125_s26, 1  ;;  %p1127_p9 = scmp.ge.s32.totalorder %s1483_s24, 2 }
   0xe   : > { %p1162_p10 = scmp.lt.s32.totalorder %s1483_s24, 2  ;;  %p1576_p11 = por %p171_p7, %p36_p0 }
   0xf   : > { %p1580_p12 = por %p177_p8, %p42_p3  ;;  %s212_s10 = sand.u32 1, %s1479_s23  }
  0x10   : > { %s1146_s11 = smul.u32 40, %s1483_s24  ;;  %p1589_p13 = pnand %p1162_p10, %p38_p5 }
  0x11   : > { %s1145_s12 = smul.u32 40, %s212_s10  ;;  %s213_s20 = scalar_lea.sflag [#allocation6], %s212_s10 }
  0x12   : > { %s221_s15 = scalar_lea.hbm %s1816_s0, %s1146_s11  ;;  %p1391_p1 = pneg %p1589_p13 }
  0x13   : > { %s223_s17 = sshll.u32 %s221_s15, 4  ;;  %s216_s18 = scalar_lea.vmem [#allocation5], %s1145_s12  ;;  %s224_s17 = int_to_ptr.hbm [resolvable:$true] %s223_s17 }
  0x14   : > { %s225_s19 = sshll.u32 %s216_s18, 4  ;;  %s1387_s26 = sshra.s32 %s224_s17, 4  ;;  %s226_s19 = int_to_ptr.vmem [resolvable:$true] %s225_s19  ;;  %s1388_s26 = int_to_ptr.hbm [resolvable:$true] %s1387_s26 }
  0x15   : > { %s1389_s28 = scalar_lea.hbm %s1388_s26, 40  ;;  %s1394_s13 = scalar_lea.hbm %s1816_s0, 80 }
  0x16   : > { %p1390_p0 = scmp.ne.s32.totalorder %s1388_s26, %s1389_s28  ;;  %p1395_p4 = scmp.lt.s32.totalorder %s1388_s26, %s1816_s0 }
  0x17   : > { %p1396_p5 = scmp.lt.s32.totalorder %s1394_s13, %s1389_s28 }
  0x18   : > { %p1392_p2 = pnand %p1391_p1, %p1390_p0 }
  0x19   : > { %p1397_p7 = por %p1396_p5, %p1395_p4 }
  0x1a   : > { %p1393_p3 = pneg %p1392_p2 }
  0x1c   : > { %p1398_p8 = pnand %p1397_p7, %p1393_p3 }
  0x1e   : > { %1401 = shalt.err (!%p1398_p8)
}
  0x1f   : > { %1157 = dma.hbm_to_vmem [thread:$0]  (!%p1589_p13), %s224_s17, 640, %s226_s19, %s213_s20  }
  0x20   : > { %p1129_p10 = scmp.ge.s32.totalorder %s1483_s24, 1  ;;  %p230_p0 = scmp.lt.s32.totalorder %s1483_s24, 3 }
  0x22   : > { %p231_p1 = pnand %p1129_p10, %p230_p0 }
  0x23   : > { %s1606_s10 = sand.u32 (!%p231_p1), 1, %s1475_s22  }
  0x24   : > { %234 = sbr.rel (%p231_p1) target bundleno = 688 (0x2b0), region = 44  ;;  %s237_s12 = scalar_lea.sflag (!%p231_p1), [#allocation6], %s1606_s10 }
  0x25   : > { %s1147_s30 = smul.u32 (!%p231_p1), 40, %s1606_s10 }
  0x27   : > { %s1610_s15 = scalar_lea.vmem (!%p231_p1), [#allocation5], %s1147_s30 }
  0x29   : > { %1462 = dma.done.wait (%p1569_p6), %s237_s12, 640  }
  0x2a   : > { %1464 = vsyncadd (%p1569_p6), %s237_s12, 4294966656  ;;  %v1617_v0 = vld [vmem:[%s1610_s15 + $0x18] sm:$0xff]  ;;  %v461_v1 = vld [vmem:[%s1610_s15 + $0x20] sm:$0xff]  ;;  %s1485_s16 = smov 109   ;;  %s1486_s7 = smov 110   ;;  %vm474_vm0 = vcmask 891904  }
  0x2b   : > { %v1621_v2 = vld [vmem:[%s1610_s15 + $0x8] sm:$0xff]  ;;  %v1206_v3 = vpack.i.bf16 %v461_v1, %v1617_v0  ;;  %v1625_v4 = vld [vmem:[%s1610_s15 + $0x10] sm:$0xff]  ;;  %s1487_s17 = smov 111   ;;  %s1488_s18 = smov 127   ;;  %v348_v7 = vld [vmem:[%s1610_s15] sm:$0xff]  ;;  %vm448_vm1 = vcmask 900096  }
  0x2c   : > { %v1216_v5 = vpack.i.bf16 %v1625_v4, %v1621_v2  ;;  %v1251_v6 = vpack.i.bf16 %v1617_v0, %v1625_v4  ;;  %s1489_s19 = smov 1   ;;  %v1256_v8 = vpack.i.bf16 %v1621_v2, %v348_v7  ;;  %s1490_s20 = smov 17   ;;  %vm422_vm2 = vcmask 908288   ;;  %v512_v36 = vld [vmem:[%s1818_s2] sm:$0xff] }
  0x2d   : > { %1207 = vrot.lane.b32.xlu0 %v1206_v3, %s1485_s16  ;;  %s1491_s26 = smov 18   ;;  %s1492_s28 = smov 19   ;;  %vm396_vm3 = vcmask 1039360   ;;  %v1493_v39 = vmov 0   ;;  %vm364_vm4 = vcmask 7168   ;;  %vm338_vm5 = vcmask 138240  }
  0x2e   : > { %1217 = vrot.lane.b32.xlu1 %v1216_v5, %s1485_s16  ;;  %1227 = vrot.lane.b32.xlu2 %v1216_v5, %s1486_s7  ;;  %vm1825_vm6 = vcmask 146432   ;;  %vm1824_vm7 = vcmask 154624   ;;  %vm1823_vm8 = vcmask 588800   ;;  %s1039_s14 = scalar_lea.sflag [#allocation7], %s1606_s10 }
  0x2f   : > { %1286 = vset.pattern.permute.xlu1 %v1493_v39  ;;  %1362 = vset.pattern.permute.xlu0 %v1493_v39 }
  0x35   : > { %1212 = vrot.lane.b32.xlu0 %v1206_v3, %s1486_s7 }
  0x36   : > { %1222 = vrot.lane.b32.xlu1 %v1206_v3, %s1487_s17  ;;  %1232 = vrot.lane.b32.xlu2 %v1206_v3, %s1488_s18 }
  0x3d   : > { %1237 = vrot.lane.b32.xlu0 %v1216_v5, %s1487_s17 }
  0x3e   : > { %1242 = vrot.lane.b32.xlu1 %v1216_v5, %s1488_s18  ;;  %1247 = vrot.lane.b32.xlu2 %v1251_v6, %s1489_s19 }
  0x45   : > { %1252 = vrot.lane.b32.xlu0 %v1251_v6, %s1490_s20 }
  0x46   : > { %1257 = vrot.lane.b32.xlu1 %v1256_v8, %s1489_s19  ;;  %1262 = vrot.lane.b32.xlu2 %v1251_v6, %s1491_s26 }
  0x4d   : > { %1267 = vrot.lane.b32.xlu0 %v1256_v8, %s1490_s20 }
  0x4e   : > { %1272 = vrot.lane.b32.xlu1 %v1251_v6, %s1492_s28  ;;  %1277 = vrot.lane.b32.xlu2 %v1256_v8, %s1491_s26 }
  0x55   : > { %1282 = vrot.lane.b32.xlu0 %v1256_v8, %s1492_s28 }
  0x56   : > { %515 = vperm.xlu1 %1286, %v512_v36  }
  0x88   : > { %v1228_v9 = vpop.permute.xlu2 %1227 }
  0x89   : > { %v1230_v10 = vunpack.i.h.bf16 %v1228_v9  ;;  %v1229_v11 = vunpack.i.l.bf16 %v1228_v9 }
  0x8b   : > { %v449_v22 = vsel %vm448_vm1, %v1229_v11, %v1230_v10  ;;  %v484_v11 = vld [vmem:[%s1817_s1] sm:$0xff] }
  0x90   : > { %v1233_v13 = vpop.permute.xlu2 %1232 }
  0x91   : > { %v1235_v24 = vunpack.i.h.bf16 %v1233_v13  ;;  %v1234_v25 = vunpack.i.l.bf16 %v1233_v13 }
  0x93   : > { %v399_v35 = vsel %vm396_vm3, %v1234_v25, %v1235_v24 }
  0x98   : > { %v1248_v31 = vpop.permute.xlu2 %1247 }
  0x99   : > { %v1250_v37 = vunpack.i.h.bf16 %v1248_v31  ;;  %v1249_v38 = vunpack.i.l.bf16 %v1248_v31 }
  0x9b   : > { %v367_v46 = vsel %vm364_vm4, %v1249_v38, %v1250_v37 }
  0x9f   : > { %v1208_v12 = vpop.permute.xlu0 %1207 }
  0xa0   : > { %v1210_v14 = vunpack.i.h.bf16 %v1208_v12  ;;  %v1209_v15 = vunpack.i.l.bf16 %v1208_v12  ;;  %v1218_v16 = vpop.permute.xlu1 %1217  ;;  %v1263_v49 = vpop.permute.xlu2 %1262 }
  0xa1   : > { %v1220_v17 = vunpack.i.h.bf16 %v1218_v16  ;;  %v1219_v18 = vunpack.i.l.bf16 %v1218_v16  ;;  %v1265_v52 = vunpack.i.h.bf16 %v1263_v49  ;;  %v1264_v53 = vunpack.i.l.bf16 %v1263_v49 }
  0xa2   : > { %v477_v19 = vsel %vm474_vm0, %v1209_v15, %v1210_v14 }
  0xa3   : > { %v476_v20 = vsel %vm474_vm0, %v1220_v17, %v1209_v15  ;;  %569 = vmatpush.msra.mxu2 %v477_v19  ;;  %v475_v21 = vsel %vm474_vm0, %v1219_v18, %v1220_v17  ;;  %v315_v61 = vsel %vm1825_vm6, %v1264_v53, %v1265_v52 }
  0xa4   : > { %549 = vmatpush.msra.mxu1 %v476_v20  ;;  %529 = vmatpush.msra.mxu0 %v475_v21 }
  0xa6   : > { %530 = vmatpush.msra.mxu0 %v449_v22 }
  0xa7   : > { %v1213_v23 = vpop.permute.xlu0 %1212 }
  0xa8   : > { %v1215_v26 = vunpack.i.h.bf16 %v1213_v23  ;;  %v1214_v27 = vunpack.i.l.bf16 %v1213_v23  ;;  %v1223_v28 = vpop.permute.xlu1 %1222 }
  0xa9   : > { %v1225_v29 = vunpack.i.h.bf16 %v1223_v28  ;;  %v1224_v30 = vunpack.i.l.bf16 %v1223_v28 }
  0xaa   : > { %v450_v32 = vsel %vm448_vm1, %v1230_v10, %v1214_v27  ;;  %v451_v33 = vsel %vm448_vm1, %v1214_v27, %v1215_v26 }
  0xab   : > { %550 = vmatpush.msra.mxu1 %v450_v32  ;;  %570 = vmatpush.msra.mxu2 %v451_v33  ;;  %v425_v34 = vsel %vm422_vm2, %v1224_v30, %v1225_v29 }
  0xad   : > { %571 = vmatpush.msra.mxu2 %v425_v34 }
  0xaf   : > { %v1238_v40 = vpop.permute.xlu0 %1237  ;;  %572 = vmatpush.msra.mxu2 %v399_v35 }
  0xb0   : > { %v1240_v41 = vunpack.i.h.bf16 %v1238_v40  ;;  %v1239_v42 = vunpack.i.l.bf16 %v1238_v40  ;;  %v1243_v43 = vpop.permute.xlu1 %1242 }
  0xb1   : > { %v1245_v44 = vunpack.i.h.bf16 %v1243_v43  ;;  %v1244_v45 = vunpack.i.l.bf16 %v1243_v43  ;;  %573 = vmatpush.msra.mxu2 %v1617_v0  ;;  %v1278_v0 = vpop.permute.xlu2 %1277 }
  0xb2   : > { %v423_v47 = vsel %vm422_vm2, %v1239_v42, %v1240_v41  ;;  %v424_v48 = vsel %vm422_vm2, %v1240_v41, %v1224_v30  ;;  %v1279_v1 = vunpack.i.l.bf16 %v1278_v0  ;;  %v1280_v3 = vunpack.i.h.bf16 %v1278_v0 }
  0xb3   : > { %531 = vmatpush.msra.mxu0 %v423_v47  ;;  %551 = vmatpush.msra.mxu1 %v424_v48  ;;  %v397_v50 = vsel %vm396_vm3, %v1244_v45, %v1245_v44  ;;  %v398_v51 = vsel %vm396_vm3, %v1245_v44, %v1234_v25 }
  0xb4   : > { %574 = vmatpush.msra.mxu2 %v367_v46  ;;  %v313_v13 = vsel %vm1825_vm6, %v1279_v1, %v1280_v3  ;;  %v314_v14 = vsel %vm1825_vm6, %v1280_v3, %v1264_v53  ;;  %v642_v46 = vld [vmem:[%s1821_s5] sm:$0x7] }
  0xb5   : > { %552 = vmatpush.msra.mxu1 %v398_v51  ;;  %532 = vmatpush.msra.mxu0 %v397_v50  ;;  %v644_v49 = vperm.slane %v642_v46, 0  ;;  %v645_v3 = vperm.slane %v642_v46, 1 }
  0xb7   : > { %v1253_v54 = vpop.permute.xlu0 %1252  ;;  %553 = vmatpush.msra.mxu1 %v1625_v4  ;;  %533 = vmatpush.msra.mxu0 %v1621_v2 }
  0xb8   : > { %v1258_v55 = vpop.permute.xlu1 %1257  ;;  %v1255_v56 = vunpack.i.h.bf16 %v1253_v54  ;;  %v1254_v57 = vunpack.i.l.bf16 %v1253_v54 }
  0xb9   : > { %v1260_v58 = vunpack.i.h.bf16 %v1258_v55  ;;  %v1259_v59 = vunpack.i.l.bf16 %v1258_v55 }
  0xba   : > { %v341_v60 = vsel %vm338_vm5, %v1254_v57, %v1255_v56 }
  0xbb   : > { %v366_v62 = vsel %vm364_vm4, %v1260_v58, %v1249_v38  ;;  %575 = vmatpush.msra.mxu2 %v341_v60  ;;  %v365_v63 = vsel %vm364_vm4, %v1259_v59, %v1260_v58 }
  0xbc   : > { %554 = vmatpush.msra.mxu1 %v366_v62  ;;  %534 = vmatpush.msra.mxu0 %v365_v63 }
  0xbd   : > { %576 = vmatpush.msra.mxu2 %v315_v61 }
  0xbf   : > { %v1268_v2 = vpop.permute.xlu0 %1267 }
  0xc0   : > { %v1270_v4 = vunpack.i.h.bf16 %v1268_v2  ;;  %v1269_v5 = vunpack.i.l.bf16 %v1268_v2  ;;  %v1273_v6 = vpop.permute.xlu1 %1272 }
  0xc1   : > { %v1275_v7 = vunpack.i.h.bf16 %v1273_v6  ;;  %v1274_v8 = vunpack.i.l.bf16 %v1273_v6 }
  0xc2   : > { %v339_v9 = vsel %vm338_vm5, %v1269_v5, %v1270_v4  ;;  %v340_v10 = vsel %vm338_vm5, %v1270_v4, %v1254_v57 }
  0xc3   : > { %535 = vmatpush.msra.mxu0 %v339_v9  ;;  %555 = vmatpush.msra.mxu1 %v340_v10  ;;  %v289_v12 = vsel %vm1824_vm7, %v1274_v8, %v1275_v7  ;;  %v646_v10 = vperm.slane %v642_v46, 2 }
  0xc4   : > { %577 = vmatpush.msra.mxu2 %v289_v12 }
  0xc5   : > { %1132 = vmatmul.msk.f32.vlgmr.msra.gmra.mxu2 %vm1823_vm8, %v484_v11  ;;  %556 = vmatpush.msra.mxu1 %v314_v14 }
  0xc6   : > { %536 = vmatpush.msra.mxu0 %v313_v13 }
  0xc7   : > { %v1283_v15 = vpop.permute.xlu0 %1282 }
  0xc8   : > { %v1285_v16 = vunpack.i.h.bf16 %v1283_v15  ;;  %v1284_v17 = vunpack.i.l.bf16 %v1283_v15  ;;  %v516_v20 = vpop.permute.xlu1 %515  ;;  %v1494_v15 = vmov 0.0  }
  0xca   : > { %v287_v18 = vsel %vm1824_vm7, %v1284_v17, %v1285_v16  ;;  %v288_v19 = vsel %vm1824_vm7, %v1285_v16, %v1274_v8 }
  0xcb   : > { %537 = vmatpush.msra.mxu0 %v287_v18  ;;  %557 = vmatpush.msra.mxu1 %v288_v19  ;;  %v895_v18 = vld [vmem:[%s1820_s4] sm:$0xf] }
  0xcc   : > { %1130 = vmatmul.msk.f32.vlgmr.msra.gmra.mxu0 %vm1823_vm8, %v484_v11  ;;  %1131 = vmatmul.msk.f32.vlgmr.msra.gmra.mxu1 %vm1823_vm8, %v484_v11 }
 0x148   : > { %v579_v21 = vpop.f32.mrf.mxu2 }
 0x149   : > { %v1685_v22 = vadd.f32 %v579_v21, %v516_v20  ;;  %v539_v23 = vpop.f32.mrf.mxu0  ;;  %v559_v24 = vpop.f32.mrf.mxu1 }
 0x14a   : > { %v540_v25 = vadd.f32 %v539_v23, %v516_v20  ;;  %v560_v26 = vadd.f32 %v559_v24, %v516_v20 }
 0x14b   : > { %v1135_v27 = vmul.f32 -1.442695, %v1685_v22 }
 0x14c   : > { %v1133_v28 = vmul.f32 -1.442695, %v540_v25  ;;  %v1134_v29 = vmul.f32 -1.442695, %v560_v26 }
 0x14d   : > { %1363 = vpow2.f32 %v1135_v27 }
 0x14e   : > { %1365 = vpow2.f32 %v1133_v28 }
 0x14f   : > { %1367 = vpow2.f32 %v1134_v29 }
 0x153   : > { %v1364_v30 = vpop.eup %1363 }
 0x154   : > { %v1366_v31 = vpop.eup %1365  ;;  %v593_v32 = vadd.f32 1.0, %v1364_v30 }
 0x155   : > { %v1368_v33 = vpop.eup %1367  ;;  %v591_v34 = vadd.f32 1.0, %v1366_v31 }
 0x156   : > { %1369 = vrcp.f32 %v593_v32  ;;  %v592_v35 = vadd.f32 1.0, %v1368_v33  ;;  %vm629_vm14 = vweird.f32 %v593_v32  ;;  %v635_v57 = vand.u32 2147483648, %v593_v32 }
 0x157   : > { %1371 = vrcp.f32 %v591_v34  ;;  %v605_v43 = vand.u32 2147483648, %v591_v34  ;;  %v603_v48 = vand.u32 2147483647, %v591_v34  ;;  %vm599_vm10 = vweird.f32 %v591_v34 }
 0x158   : > { %1373 = vrcp.f32 %v592_v35  ;;  %v620_v53 = vand.u32 2147483648, %v592_v35  ;;  %v618_v56 = vand.u32 2147483647, %v592_v35  ;;  %v633_v60 = vand.u32 2147483647, %v593_v32 }
 0x159   : > { %v606_v52 = vor.u32 1.1754944e-38, %v605_v43  ;;  %vm604_vm15 = vcmp.eq.f32.partialorder %v603_v48, 8.507059e+37  ;;  %vm614_vm7 = vweird.f32 %v592_v35  ;;  %v636_v4 = vor.u32 1.1754944e-38, %v635_v57 }
 0x15a   : > { %v621_v0 = vor.u32 1.1754944e-38, %v620_v53 }
 0x15c   : > { %v1370_v36 = vpop.eup %1369 }
 0x15d   : > { %v1372_v37 = vpop.eup %1371  ;;  %v625_v38 = vmul.f32 %v1370_v36, %v593_v32  ;;  %vm630_vm11 = vweird.f32 %v1370_v36 }
 0x15e   : > { %v595_v39 = vmul.f32 %v1372_v37, %v591_v34  ;;  %v1374_v41 = vpop.eup %1373  ;;  %vm600_vm9 = vweird.f32 %v1372_v37  ;;  %vm1691_vm8 = vmor %vm629_vm14, %vm630_vm11 }
 0x15f   : > { %v626_v40 = vsub.f32 1.0, %v625_v38  ;;  %v610_v45 = vmul.f32 %v1374_v41, %v592_v35  ;;  %vm601_vm12 = vmor %vm599_vm10, %vm600_vm9  ;;  %vm615_vm13 = vweird.f32 %v1374_v41  ;;  %vm619_vm9 = vcmp.eq.f32.partialorder %v618_v56, 8.507059e+37 }
 0x160   : > { %v596_v42 = vsub.f32 1.0, %v595_v39  ;;  %vm616_vm6 = vmor %vm614_vm7, %vm615_vm13  ;;  %vm634_vm10 = vcmp.eq.f32.partialorder %v633_v60, 8.507059e+37 }
 0x161   : > { %v627_v44 = vmul.f32 %v1370_v36, %v626_v40  ;;  %v611_v50 = vsub.f32 1.0, %v610_v45 }
 0x162   : > { %v597_v47 = vmul.f32 %v1372_v37, %v596_v42 }
 0x163   : > { %v628_v54 = vadd.f32 %v1370_v36, %v627_v44  ;;  %v612_v55 = vmul.f32 %v1374_v41, %v611_v50 }
 0x164   : > { %v598_v51 = vadd.f32 %v1372_v37, %v597_v47 }
 0x165   : > { %v613_v62 = vadd.f32 %v1374_v41, %v612_v55  ;;  %v632_v1 = vsel %vm1691_vm8, %v1370_v36, %v628_v54 }
 0x166   : > { %v602_v58 = vsel %vm601_vm12, %v1372_v37, %v598_v51  ;;  %v637_v8 = vsel %vm634_vm10, %v636_v4, %v632_v1 }
 0x167   : > { %v607_v61 = vsel %vm604_vm15, %v606_v52, %v602_v58  ;;  %v617_v2 = vsel %vm616_vm6, %v1374_v41, %v613_v62  ;;  %v641_v11 = vmul.f32 %v637_v8, %v1685_v22 }
 0x168   : > { %v639_v63 = vmul.f32 %v607_v61, %v540_v25  ;;  %v622_v5 = vsel %vm619_vm9, %v621_v0, %v617_v2 }
 0x169   : > { %v640_v7 = vmul.f32 %v622_v5, %v560_v26  ;;  %v1707_v13 = vmul.f32 %v646_v10, %v641_v11 }
 0x16a   : > { %v1697_v6 = vmul.f32 %v644_v49, %v639_v63 }
 0x16b   : > { %v1699_v9 = vmul.f32 %v645_v3, %v640_v7  ;;  %v1327_v14 = vpack.i.bf16 0.0, %v1707_v13 }
 0x16c   : > { %v1312_v16 = vpack.i.bf16 %v1697_v6, %v1494_v15 }
 0x16d   : > { %v1297_v12 = vpack.i.bf16 %v1699_v9, %v1697_v6  ;;  %v1347_v17 = vpack.i.bf16 %v1707_v13, %v1699_v9 }
 0x16f   : > { %1298 = vrot.lane.b32.xlu1 %v1297_v12, %s1487_s17  ;;  %1293 = vrot.lane.b32.xlu0 %v1297_v12, %s1486_s7 }
 0x170   : > { %1288 = vrot.lane.b32.xlu2 %v1297_v12, %s1485_s16 }
 0x177   : > { %1328 = vrot.lane.b32.xlu1 %v1327_v14, %s1486_s7  ;;  %1303 = vrot.lane.b32.xlu0 %v1297_v12, %s1488_s18 }
 0x178   : > { %1313 = vrot.lane.b32.xlu2 %v1312_v16, %s1490_s20 }
 0x17f   : > { %1343 = vrot.lane.b32.xlu1 %v1327_v14, %s1488_s18  ;;  %1308 = vrot.lane.b32.xlu0 %v1312_v16, %s1489_s19  ;;  %s1437_s18 = scalar_lea.hbm %s1822_s6, 24 }
 0x180   : > { %1323 = vrot.lane.b32.xlu2 %v1327_v14, %s1485_s16 }
 0x187   : > { %1348 = vrot.lane.b32.xlu1 %v1347_v17, %s1489_s19  ;;  %1318 = vrot.lane.b32.xlu0 %v1312_v16, %s1491_s26  ;;  %s1148_s19 = smul.u32 12, %s1606_s10 }
 0x188   : > { %1333 = vrot.lane.b32.xlu2 %v1327_v14, %s1487_s17 }
 0x189   : > { %s269_s29 = scalar_lea.vmem [#allocation8], %s1148_s19 }
 0x18a   : > { %s1052_s11 = sshll.u32 %s269_s29, 4  ;;  %s1053_s11 = int_to_ptr.vmem [resolvable:$true] %s1052_s11 }
 0x18f   : > { %1358 = vrot.lane.b32.xlu1 %v1347_v17, %s1491_s26  ;;  %1353 = vrot.lane.b32.xlu0 %v1347_v17, %s1490_s20  ;;  %s1149_s20 = smul.u32 12, %s1551_s25 }
 0x190   : > { %1338 = vrot.lane.b32.xlu2 %v1312_v16, %s1492_s28 }
 0x191   : > { %s1050_s25 = scalar_lea.hbm %s1822_s6, %s1149_s20 }
 0x192   : > { %s1054_s13 = sshll.u32 %s1050_s25, 4  ;;  %s1055_s13 = int_to_ptr.hbm [resolvable:$true] %s1054_s13 }
 0x193   : > { %s1431_s30 = sshra.s32 %s1055_s13, 4  ;;  %s1432_s30 = int_to_ptr.hbm [resolvable:$true] %s1431_s30 }
 0x194   : > { %s1433_s12 = scalar_lea.hbm %s1432_s30, 12  ;;  %p1438_p3 = scmp.lt.s32.totalorder %s1432_s30, %s1822_s6 }
 0x195   : > { %p1434_p6 = scmp.ne.s32.totalorder %s1432_s30, %s1433_s12  ;;  %p1439_p4 = scmp.lt.s32.totalorder %s1437_s18, %s1433_s12 }
 0x197   : > { %898 = vperm.xlu1 %1286, %v895_v18   ;;  %675 = vrot.lane.b32.xlu0 %v1707_v13, %s1492_s28  ;;  %p1435_p13 = pnand %p1434_p6, %p1576_p11  ;;  %p1440_p5 = por %p1439_p4, %p1438_p3 }
 0x198   : > { %673 = vrot.lane.b32.xlu2 %v1699_v9, %s1492_s28 }
 0x199   : > { %p1436_p2 = pneg %p1435_p13 }
 0x19b   : > { %p1441_p7 = pnand %p1440_p5, %p1436_p2 }
 0x1ca   : > { %v1289_v19 = vpop.permute.xlu2 %1288 }
 0x1cb   : > { %v1291_v20 = vunpack.i.h.bf16 %v1289_v19  ;;  %v1290_v21 = vunpack.i.l.bf16 %v1289_v19 }
 0x1cd   : > { %v858_v22 = vsel %vm474_vm0, %v1290_v21, %v1291_v20 }
 0x1ce   : > { %911 = vmatpush.msra.mxu3 %v858_v22 }
 0x1d2   : > { %v1733_v23 = vpop.permute.xlu2 %1313 }
 0x1d3   : > { %v1316_v51 = vunpack.i.h.bf16 %v1733_v23  ;;  %v1315_v52 = vunpack.i.l.bf16 %v1733_v23 }
 0x1d5   : > { %v727_v63 = vsel %vm338_vm5, %v1315_v52, %v1316_v51 }
 0x1da   : > { %v1324_v24 = vpop.permute.xlu2 %1323 }
 0x1db   : > { %v1326_v25 = vunpack.i.h.bf16 %v1324_v24  ;;  %v1325_v26 = vunpack.i.l.bf16 %v1324_v24 }
 0x1dd   : > { %v859_v27 = vsel %vm474_vm0, %v1291_v20, %v1325_v26  ;;  %v860_v28 = vsel %vm474_vm0, %v1325_v26, %v1326_v25  ;;  %vm1833_vm0 = vcmask 146432  }
 0x1de   : > { %931 = vmatpush.msrb.mxu0 %v859_v27  ;;  %951 = vmatpush.msrb.mxu1 %v860_v28 }
 0x1e1   : > { %v1299_v29 = vpop.permute.xlu1 %1298  ;;  %v1294_v30 = vpop.permute.xlu0 %1293 }
 0x1e2   : > { %v1301_v31 = vunpack.i.h.bf16 %v1299_v29  ;;  %v1300_v32 = vunpack.i.l.bf16 %v1299_v29  ;;  %v1296_v33 = vunpack.i.h.bf16 %v1294_v30  ;;  %v1295_v34 = vunpack.i.l.bf16 %v1294_v30  ;;  %v1334_v36 = vpop.permute.xlu2 %1333 }
 0x1e3   : > { %v1335_v38 = vunpack.i.l.bf16 %v1334_v36  ;;  %v1336_v45 = vunpack.i.h.bf16 %v1334_v36 }
 0x1e4   : > { %v833_v35 = vsel %vm448_vm1, %v1295_v34, %v1296_v33  ;;  %v808_v37 = vsel %vm422_vm2, %v1300_v32, %v1301_v31 }
 0x1e5   : > { %912 = vmatpush.msra.mxu3 %v833_v35  ;;  %v809_v49 = vsel %vm422_vm2, %v1301_v31, %v1335_v38  ;;  %v810_v50 = vsel %vm422_vm2, %v1335_v38, %v1336_v45  ;;  %vm1835_vm2 = vcmask 588800  }
 0x1e6   : > { %vm1839_vm7 = vmmov %vm1835_vm2 }
 0x1e7   : > { %913 = vmatpush.msra.mxu3 %v808_v37  ;;  %vm1841_vm11 = vmmov %vm1835_vm2 }
 0x1e9   : > { %v1329_v39 = vpop.permute.xlu1 %1328  ;;  %v1304_v40 = vpop.permute.xlu0 %1303 }
 0x1ea   : > { %v1331_v41 = vunpack.i.h.bf16 %v1329_v39  ;;  %v1330_v42 = vunpack.i.l.bf16 %v1329_v39  ;;  %v1306_v43 = vunpack.i.h.bf16 %v1304_v40  ;;  %v1305_v44 = vunpack.i.l.bf16 %v1304_v40  ;;  %v1339_v62 = vpop.permute.xlu2 %1338 }
 0x1eb   : > { %v1341_v0 = vunpack.i.h.bf16 %v1339_v62  ;;  %v1340_v1 = vunpack.i.l.bf16 %v1339_v62 }
 0x1ec   : > { %v783_v46 = vsel %vm396_vm3, %v1305_v44, %v1306_v43  ;;  %v834_v47 = vsel %vm448_vm1, %v1296_v33, %v1330_v42  ;;  %v835_v48 = vsel %vm448_vm1, %v1330_v42, %v1331_v41  ;;  %vm1834_vm1 = vcmask 154624  }
 0x1ed   : > { %914 = vmatpush.msra.mxu3 %v783_v46  ;;  %932 = vmatpush.msrb.mxu0 %v834_v47  ;;  %v677_v12 = vsel %vm1834_vm1, %v1340_v1, %v1341_v0  ;;  %vm1838_vm6 = vmmov %vm1834_vm1 }
 0x1ee   : > { %952 = vmatpush.msrb.mxu1 %v835_v48  ;;  %vm1840_vm8 = vmmov %vm1834_vm1 }
 0x1ef   : > { %915 = vmatpush.msra.mxu3 %v1697_v6  ;;  %933 = vmatpush.msrb.mxu0 %v809_v49 }
 0x1f0   : > { %953 = vmatpush.msrb.mxu1 %v810_v50 }
 0x1f1   : > { %v1344_v53 = vpop.permute.xlu1 %1343  ;;  %v1309_v54 = vpop.permute.xlu0 %1308 }
 0x1f2   : > { %v1346_v55 = vunpack.i.h.bf16 %v1344_v53  ;;  %v1345_v56 = vunpack.i.l.bf16 %v1344_v53  ;;  %v1311_v57 = vunpack.i.h.bf16 %v1309_v54  ;;  %v1310_v58 = vunpack.i.l.bf16 %v1309_v54  ;;  %v674_v21 = vpop.permute.xlu2 %673 }
 0x1f3   : > { %v678_v24 = vsel %vm1838_vm6, %v1341_v0, %v674_v21  ;;  %vm1033_vm6 = vcmask 1043456  }
 0x1f4   : > { %v752_v59 = vsel %vm364_vm4, %v1310_v58, %v1311_v57  ;;  %v784_v60 = vsel %vm396_vm3, %v1306_v43, %v1345_v56  ;;  %v785_v61 = vsel %vm396_vm3, %v1345_v56, %v1346_v55  ;;  %vm1836_vm3 = vmmov %vm1833_vm0 }
 0x1f5   : > { %916 = vmatpush.msra.mxu3 %v752_v59  ;;  %934 = vmatpush.msrb.mxu0 %v784_v60 }
 0x1f6   : > { %954 = vmatpush.msrb.mxu1 %v785_v61 }
 0x1f7   : > { %917 = vmatpush.msra.mxu3 %v727_v63  ;;  %935 = vmatpush.msrb.mxu0 %v1699_v9  ;;  %v867_v9 = vld [vmem:[%s1819_s3] sm:$0xf] }
 0x1f8   : > { %955 = vmatpush.msrb.mxu1 %v1707_v13 }
 0x1f9   : > { %v1349_v2 = vpop.permute.xlu1 %1348  ;;  %v1319_v3 = vpop.permute.xlu0 %1318 }
 0x1fa   : > { %v1351_v4 = vunpack.i.h.bf16 %v1349_v2  ;;  %v1350_v5 = vunpack.i.l.bf16 %v1349_v2  ;;  %v1321_v6 = vunpack.i.h.bf16 %v1319_v3  ;;  %v1320_v7 = vunpack.i.l.bf16 %v1319_v3 }
 0x1fc   : > { %v702_v8 = vsel %vm1833_vm0, %v1320_v7, %v1321_v6  ;;  %v753_v10 = vsel %vm364_vm4, %v1311_v57, %v1350_v5  ;;  %v754_v11 = vsel %vm364_vm4, %v1350_v5, %v1351_v4  ;;  %vm1837_vm4 = vmmov %vm1833_vm0 }
 0x1fd   : > { %918 = vmatpush.msra.mxu3 %v702_v8  ;;  %936 = vmatpush.msrb.mxu0 %v753_v10 }
 0x1fe   : > { %956 = vmatpush.msrb.mxu1 %v754_v11 }
 0x1ff   : > { %919 = vmatpush.msra.mxu3 %v677_v12 }
 0x200   : > { %1136 = vmatmul.msk.f32.vlgmr.msra.gmra.mxu3 %vm1835_vm2, %v867_v9 }
 0x201   : > { %v1359_v13 = vpop.permute.xlu1 %1358  ;;  %v1354_v14 = vpop.permute.xlu0 %1353 }
 0x202   : > { %v1361_v15 = vunpack.i.h.bf16 %v1359_v13  ;;  %v1360_v16 = vunpack.i.l.bf16 %v1359_v13  ;;  %v1356_v17 = vunpack.i.h.bf16 %v1354_v14  ;;  %v1355_v18 = vunpack.i.l.bf16 %v1354_v14 }
 0x204   : > { %v728_v19 = vsel %vm338_vm5, %v1316_v51, %v1355_v18  ;;  %v729_v20 = vsel %vm338_vm5, %v1355_v18, %v1356_v17  ;;  %v703_v22 = vsel %vm1836_vm3, %v1321_v6, %v1360_v16  ;;  %v704_v23 = vsel %vm1837_vm4, %v1360_v16, %v1361_v15  ;;  %v1025_v6 = vld [vmem:[%s1610_s15 + $0x10] sm:$0xf]  ;;  %v1026_v15 = vld [vmem:[%s1610_s15 + $0x18] sm:$0xf] }
 0x205   : > { %937 = vmatpush.msrb.mxu0 %v728_v19  ;;  %957 = vmatpush.msrb.mxu1 %v729_v20 }
 0x207   : > { %938 = vmatpush.msrb.mxu0 %v703_v22  ;;  %958 = vmatpush.msrb.mxu1 %v704_v23 }
 0x209   : > { %v676_v25 = vpop.permute.xlu0 %675  ;;  %939 = vmatpush.msrb.mxu0 %v678_v24  ;;  %v899_v27 = vpop.permute.xlu1 %898 }
 0x20a   : > { %1137 = vmatmul.msk.f32.vlgmr.msrb.gmra.mxu0 %vm1839_vm7, %v867_v9  ;;  %v679_v26 = vsel %vm1840_vm8, %v674_v21, %v676_v25 }
 0x20b   : > { %959 = vmatpush.msrb.mxu1 %v679_v26 }
 0x20c   : > { %1138 = vmatmul.msk.f32.vlgmr.msrb.gmra.mxu1 %vm1841_vm11, %v867_v9  ;;  %v1024_v9 = vld [vmem:[%s1610_s15 + $0x8] sm:$0xf] }
 0x283   : > { %v921_v28 = vpop.f32.mrf.mxu3 }
 0x284   : > { %v922_v29 = vadd.f32 %v921_v28, %v899_v27 }
 0x286   : > { %v1139_v30 = vmul.f32 -1.442695, %v922_v29 }
 0x287   : > { %v941_v31 = vpop.f32.mrf.mxu0 }
 0x288   : > { %1375 = vpow2.f32 %v1139_v30  ;;  %v942_v32 = vadd.f32 %v941_v31, %v899_v27 }
 0x289   : > { %v961_v33 = vpop.f32.mrf.mxu1 }
 0x28a   : > { %v1140_v34 = vmul.f32 -1.442695, %v942_v32  ;;  %v1769_v35 = vadd.f32 %v961_v33, %v899_v27 }
 0x28c   : > { %1377 = vpow2.f32 %v1140_v34  ;;  %v1141_v36 = vmul.f32 -1.442695, %v1769_v35 }
 0x28e   : > { %v1376_v37 = vpop.eup %1375  ;;  %1379 = vpow2.f32 %v1141_v36 }
 0x28f   : > { %v973_v38 = vadd.f32 1.0, %v1376_v37 }
 0x291   : > { %1381 = vrcp.f32 %v973_v38  ;;  %v985_v49 = vand.u32 2147483647, %v973_v38  ;;  %v987_v50 = vand.u32 2147483648, %v973_v38  ;;  %vm981_vm12 = vweird.f32 %v973_v38 }
 0x292   : > { %v1378_v39 = vpop.eup %1377 }
 0x293   : > { %v974_v40 = vadd.f32 1.0, %v1378_v39  ;;  %vm986_vm15 = vcmp.eq.f32.partialorder %v985_v49, 8.507059e+37  ;;  %v988_v60 = vor.u32 1.1754944e-38, %v987_v50 }
 0x294   : > { %v1380_v41 = vpop.eup %1379 }
 0x295   : > { %1383 = vrcp.f32 %v974_v40  ;;  %v975_v42 = vadd.f32 1.0, %v1380_v41  ;;  %v1002_v54 = vand.u32 2147483648, %v974_v40  ;;  %v1000_v59 = vand.u32 2147483647, %v974_v40 }
 0x296   : > { %vm996_vm9 = vweird.f32 %v974_v40 }
 0x297   : > { %v1382_v43 = vpop.eup %1381  ;;  %1385 = vrcp.f32 %v975_v42  ;;  %v1003_v63 = vor.u32 1.1754944e-38, %v1002_v54  ;;  %v1017_v0 = vand.u32 2147483648, %v975_v42  ;;  %v1015_v3 = vand.u32 2147483647, %v975_v42 }
 0x298   : > { %v977_v44 = vmul.f32 %v1382_v43, %v973_v38  ;;  %vm982_vm5 = vweird.f32 %v1382_v43  ;;  %vm1001_vm1 = vcmp.eq.f32.partialorder %v1000_v59, 8.507059e+37  ;;  %vm1011_vm2 = vweird.f32 %v975_v42 }
 0x299   : > { %vm1772_vm13 = vmor %vm981_vm12, %vm982_vm5  ;;  %v1018_v11 = vor.u32 1.1754944e-38, %v1017_v0  ;;  %vm1016_vm4 = vcmp.eq.f32.partialorder %v1015_v3, 8.507059e+37 }
 0x29a   : > { %v978_v45 = vsub.f32 1.0, %v977_v44 }
 0x29b   : > { %v1384_v46 = vpop.eup %1383 }
 0x29c   : > { %v979_v47 = vmul.f32 %v1382_v43, %v978_v45  ;;  %v992_v48 = vmul.f32 %v1384_v46, %v974_v40  ;;  %vm997_vm14 = vweird.f32 %v1384_v46 }
 0x29d   : > { %v1386_v51 = vpop.eup %1385  ;;  %vm998_vm10 = vmor %vm996_vm9, %vm997_vm14 }
 0x29e   : > { %v980_v52 = vadd.f32 %v1382_v43, %v979_v47  ;;  %v993_v53 = vsub.f32 1.0, %v992_v48  ;;  %v1007_v56 = vmul.f32 %v1386_v51, %v975_v42  ;;  %vm1012_vm0 = vweird.f32 %v1386_v51 }
 0x29f   : > { %vm1013_vm3 = vmor %vm1011_vm2, %vm1012_vm0 }
 0x2a0   : > { %v984_v57 = vsel %vm1772_vm13, %v1382_v43, %v980_v52  ;;  %v994_v58 = vmul.f32 %v1384_v46, %v993_v53  ;;  %v1008_v61 = vsub.f32 1.0, %v1007_v56 }
 0x2a1   : > { %v989_v1 = vsel %vm986_vm15, %v988_v60, %v984_v57 }
 0x2a2   : > { %v995_v62 = vadd.f32 %v1384_v46, %v994_v58  ;;  %v1009_v2 = vmul.f32 %v1386_v51, %v1008_v61  ;;  %v1021_v8 = vmul.f32 %v989_v1, %v922_v29 }
 0x2a4   : > { %v999_v4 = vsel %vm998_vm10, %v1384_v46, %v995_v62  ;;  %v1010_v7 = vadd.f32 %v1386_v51, %v1009_v2  ;;  %v1027_v17 = vadd.f32 %v1024_v9, %v1021_v8 }
 0x2a5   : > { %v1004_v5 = vsel %vm1001_vm1, %v1003_v63, %v999_v4 }
 0x2a6   : > { %v1022_v10 = vmul.f32 %v1004_v5, %v942_v32  ;;  %v1014_v12 = vsel %vm1013_vm3, %v1386_v51, %v1010_v7 }
 0x2a7   : > { %v1019_v14 = vsel %vm1016_vm4, %v1018_v11, %v1014_v12 }
 0x2a8   : > { %v1028_v13 = vadd.f32 %v1025_v6, %v1022_v10  ;;  %v1023_v16 = vmul.f32 %v1019_v14, %v1769_v35 }
 0x2aa   : > { %v1032_v18 = vrot.slane %v1028_v13, 4  ;;  %v1029_v19 = vadd.f32 %v1026_v15, %v1023_v16 }
 0x2ac   : > { %v1034_v20 = vsel %vm1033_vm6, %v1027_v17, %v1032_v18  ;;  %1037 = vst [vmem:[%s269_s29 + $0x8] sm:$0xf] %v1029_v19 }
 0x2ad   : > { %1036 = vst [vmem:[%s269_s29] sm:$0xff] %v1034_v20 }
 0x2ae   : > { %1444 = shalt.err (!%p1441_p7)
}
 0x2af   : > { %1152 = dma.vmem_to_hbm [thread:$0]  (%p1576_p11), %s1053_s11, 192, %s1055_s13, %s1039_s14  }
 0x2b0 PF: > { %s1066_s10 = sand.u32 1, %s1471_s21   ;;  %p1159_p8 = pnand %p1127_p9, %p1580_p12 }
 0x2b1   : > { %s1067_s19 = scalar_lea.sflag [#allocation7], %s1066_s10 }
 0x2b2   : > { %p1160_p10 = pneg %p1159_p8 }
 0x2b4   : > { %1466 = dma.done.wait (%p1160_p10), %s1067_s19, 192  }
 0x2b5   : > { %1468 = vsyncadd (%p1160_p10), %s1067_s19, 4294967104  ;;  %s1844_s20 = sld [smem:[#allocation11_spill]]  ;;  %p19_p0 = scmp.ge.s32.totalorder %s1555_s27, 4  }
 0x2b6   : > { %s1845_s21 = smov %s1475_s22  ;;  %s1846_s22 = smov %s1479_s23 }
 0x2b7   : > { %s1848_s24 = smov %s1555_s27  ;;  %21 = sbr.rel (!%p19_p0) target bundleno = 5 (0x5), region = 89 }
 0x2bb   : > { %s1847_s23 = smov %s1844_s20 }
 0x2bc   :  { %1073 = vsyncpa [#allocation6], 1 }
 0x2bd   :  { %1075 = vsyncpa [#allocation6 + $0x1], 1 }
 0x2be   :  { %1076 = vsyncpa [#allocation7], 1 }
 0x2bf   :  { %1078 = vsyncpa [#allocation7 + $0x1], 1 }

</bundles_post_ra>
